<compile_context>
chip_gen: v5e
topology: v5e:2x2
jax: 0.10.0
libtpu: 0.0.40
codegen_flags: <defaults>
</compile_context>

<pallas_src>
import functools

import jax
import jax.numpy as jnp
import numpy as np
from jax import lax
from jax.experimental import pallas as pl
from jax.experimental.pallas import tpu as pltpu


def _round_up(x, m):
    return (x + m - 1) // m * m


def _default_direct_min_cin():
    # Direct K-accumulated dots pay off once the channel count alone fills the
    # MXU contraction: 128 on v5e/v5p (128-wide MXU), 256 on v6e/v7x.
    try:
        kind = jax.devices()[0].device_kind.lower()
    except Exception:
        return 256
    return 128 if "v5" in kind else 256


def _conv_kernel_im2col(x_ref, xh_ref, w_ref, b_ref, m_ref, o_ref, xunf_ref, *,
                        kernel_size, dilation, c_in_pad, tile):
    """Small-C_in path: fold the K dilated taps into ONE MXU contraction.

    x_ref    : (c_in_pad, tile)       bf16 input window for this output tile
    xh_ref   : (c_in_pad, halo_blk)   bf16 right halo (columns after the tile)
    w_ref    : (C_out, K*c_in_pad)    bf16 unfolded weights (VMEM resident)
    b_ref    : (C_out, 1)             f32 bias
    m_ref    : (1, tile)              int8 keep-mask
    o_ref    : (C_out, tile)          output tile
    xunf_ref : (K*c_in_pad, tile)     bf16 im2col scratch
    """
    c = c_in_pad
    for k in range(kernel_size):                      # K is small -> static unroll
        s = k * dilation
        rows = slice(k * c, (k + 1) * c)
        if s < tile:
            xunf_ref[rows, :tile - s] = x_ref[:, s:]
        if s > 0:
            xunf_ref[rows, tile - s:] = xh_ref[:, :s]
    acc = jnp.dot(w_ref[...], xunf_ref[...], preferred_element_type=jnp.float32)
    acc = acc + b_ref[...]                            # bias in f32
    keep = m_ref[...].astype(jnp.int32) != 0          # (1, tile), broadcasts
    # jnp.where (not multiply) == PyTorch masked_fill even for NaN/Inf.
    o_ref[...] = jnp.where(keep, acc, 0.0).astype(o_ref.dtype)


def _conv_kernel_direct(x_ref, xh_ref, w_ref, b_ref, m_ref, o_ref, acc_ref, *,
                        kernel_size, dilation, tile):
    """Large-C_in path: K accumulated dots, no VMEM->VMEM im2col copy.

    w_ref   : (K, C_out, c_in_pad) bf16 weights, per-tap slab on the leading dim
    acc_ref : (C_out, tile)        f32 accumulator scratch
    Other refs as in the im2col kernel.
    """
    for k in range(kernel_size):
        s = k * dilation
        wk = w_ref[k]                                 # (C_out, c_in_pad)
        if k == 0:                                    # s == 0: full-width init
            acc_ref[...] = jnp.dot(wk, x_ref[...],
                                   preferred_element_type=jnp.float32)
        else:
            if s < tile:                              # part served by the main block
                acc_ref[:, :tile - s] += jnp.dot(
                    wk, x_ref[:, s:], preferred_element_type=jnp.float32)
            if s > 0:                                 # tail served by the halo block
                acc_ref[:, tile - s:] += jnp.dot(
                    wk, xh_ref[:, :s], preferred_element_type=jnp.float32)
    acc = acc_ref[...] + b_ref[...]
    keep = m_ref[...].astype(jnp.int32) != 0
    o_ref[...] = jnp.where(keep, acc, 0.0).astype(o_ref.dtype)


def _vmem_limit_bytes(*, c_in_pad, c_out, K, tile, halo_blk, compute_dtype,
                      out_dtype, use_direct):
    ci = jnp.dtype(compute_dtype).itemsize
    oi = jnp.dtype(out_dtype).itemsize
    est = 0
    est += 2 * c_in_pad * tile * ci            # x window (double-buffered)
    est += 2 * c_in_pad * halo_blk * ci        # x halo   (double-buffered)
    est += 2 * K * c_in_pad * c_out * ci       # weights
    est += 2 * c_out * 4                       # bias
    est += 2 * tile                            # int8 mask
    est += 2 * c_out * tile * oi               # output tile
    est += (c_out * tile * 4) if use_direct else (K * c_in_pad * tile * ci)
    # 2x slack + headroom for compiler-internal scratch; capped BELOW v7x's
    # 64 MiB physical VMEM per TensorCore (never binding on v5e/v6e's 128 MiB
    # at these tile sizes).
    return int(min(max(2 * est + (16 << 20), 32 << 20), 56 << 20))


def conv_layer_forward(x, mask, weight, bias, *, dilation, l_tile=1024,
                       compute_dtype=jnp.bfloat16, out_dtype=None,
                       direct_min_cin=None):
    """ConvLayer.forward: y = masked_fill(Conv1d(x, 'same', dilation=d), ~mask, 0).

    x: (N, C_in, L) f32, mask: (N, L) bool, weight: (C_out, C_in, K),
    bias: (C_out,).  Returns (N, C_out, L) in out_dtype (default x.dtype).
    l_tile: length-tile size, rounded to a 128 multiple (sweep 512-2048 on
    v5e/v6e; 512-1024 on v7x).
    """
    N, C_in, L = x.shape
    C_out, _, K = weight.shape
    out_dtype = x.dtype if out_dtype is None else jnp.dtype(out_dtype)

    # PyTorch padding='same' (stride=1): total = dilation*(K-1), left = total//2.
    halo = dilation * (K - 1)
    pad_l = halo // 2
    pad_r = halo - pad_l

    # Pad channels to a packed-sublane multiple of the compute dtype
    # (16 rows for bf16, 8 for f32).
    sub = 8 * (4 // jnp.dtype(compute_dtype).itemsize)
    c_in_pad = _round_up(C_in, sub)

    if direct_min_cin is None:
        direct_min_cin = _default_direct_min_cin()
    use_direct = c_in_pad >= direct_min_cin

    # Lane-dense output tiles (always a 128 multiple, including short L).
    # The x window for output tile l is served by two blocked inputs:
    #   main block : columns [l*tile, (l+1)*tile)
    #   halo block : columns [(l+1)*tile, (l+1)*tile + halo_blk)
    # so x is never whole-row resident in VMEM (VMEM capped independent of L).
    halo_blk = _round_up(max(halo, 1), 128)
    tile = _round_up(min(max(int(l_tile), 1), max(L, 1)), 128)
    tile = _round_up(tile, halo_blk)          # halo-block index must divide tile
    l_round = _round_up(L, tile)
    num_l = l_round // tile

    # One fused pad/cast pass over x: channel pad, 'same' halo, round-up to the
    # tile grid plus one halo block, f32 -> bf16.
    # TODO(synk): fuse this pad into the producer (or zero-fill the boundary
    # taps in-kernel) to save this extra HBM round trip over x.
    x_pad = jnp.pad(
        x.astype(compute_dtype),
        ((0, 0), (0, c_in_pad - C_in),
         (pad_l, pad_r + (l_round - L) + (halo_blk - halo))))

    mask_i = jnp.pad(mask.astype(jnp.int8), ((0, 0), (0, l_round - L)))
    mask_i = mask_i.reshape(N, 1, l_round)
    bias2d = bias.astype(jnp.float32).reshape(C_out, 1)

    if use_direct:
        # (C_out, C_in, K) -> (K, C_out, c_in_pad): per-tap slabs indexed on the
        # leading dim (no lane slicing of the weights in-kernel).
        w_in = jnp.pad(jnp.transpose(weight, (2, 0, 1)),
                       ((0, 0), (0, 0), (0, c_in_pad - C_in))).astype(compute_dtype)
        w_spec = pl.BlockSpec((K, C_out, c_in_pad), lambda n, l: (0, 0, 0))
        scratch = [pltpu.VMEM((C_out, tile), jnp.float32)]
        kernel = functools.partial(_conv_kernel_direct, kernel_size=K,
                                   dilation=dilation, tile=tile)
    else:
        # (C_out, C_in, K) -> lane-dense unfolded (C_out, K*c_in_pad), zeroed
        # rows for the padded channels.
        w_unf = jnp.pad(jnp.transpose(weight, (2, 1, 0)),
                        ((0, 0), (0, c_in_pad - C_in), (0, 0)))
        w_in = w_unf.reshape(K * c_in_pad, C_out).T.astype(compute_dtype)
        w_spec = pl.BlockSpec((C_out, K * c_in_pad), lambda n, l: (0, 0))
        scratch = [pltpu.VMEM((K * c_in_pad, tile), compute_dtype)]
        kernel = functools.partial(_conv_kernel_im2col, kernel_size=K,
                                   dilation=dilation, c_in_pad=c_in_pad, tile=tile)

    vmem_bytes = _vmem_limit_bytes(
        c_in_pad=c_in_pad, c_out=C_out, K=K, tile=tile, halo_blk=halo_blk,
        compute_dtype=compute_dtype, out_dtype=out_dtype, use_direct=use_direct)

    halo_ratio = tile // halo_blk

    out = pl.pallas_call(
        kernel,
        out_shape=jax.ShapeDtypeStruct((N, C_out, l_round), out_dtype),
        grid=(N, num_l),
        in_specs=[
            # Main x window for this output tile.
            pl.BlockSpec((None, c_in_pad, tile), lambda n, l: (n, 0, l)),
            # Right halo: the >=128-wide block starting at column (l+1)*tile.
            pl.BlockSpec((None, c_in_pad, halo_blk),
                         lambda n, l: (n, 0, (l + 1) * halo_ratio)),
            w_spec,                                                  # weights (resident)
            pl.BlockSpec((C_out, 1), lambda n, l: (0, 0)),           # bias (resident)
            pl.BlockSpec((None, 1, tile), lambda n, l: (n, 0, l)),   # mask tile (int8)
        ],
        out_specs=pl.BlockSpec((None, C_out, tile), lambda n, l: (n, 0, l)),
        scratch_shapes=scratch,
        compiler_params=pltpu.CompilerParams(
            # Every (n, l) writes a disjoint output tile -> both axes megacore-shardable.
            dimension_semantics=("parallel", "parallel"),
            vmem_limit_bytes=vmem_bytes,
        ),
    )(x_pad, x_pad, w_in, bias2d, mask_i)

    return out[:, :, :L]


def _reference(x, mask, weight, bias, *, dilation):
    K = weight.shape[-1]
    total_pad = dilation * (K - 1)
    pad_l = total_pad // 2
    pad_r = total_pad - pad_l
    out = lax.conv_general_dilated(
        x, weight,
        window_strides=(1,),
        padding=[(pad_l, pad_r)],
        rhs_dilation=(dilation,),
        dimension_numbers=('NCH', 'OIH', 'NCH'),
        precision=lax.Precision.HIGHEST,
    ) + bias[None, :, None]
    return jnp.where(mask[:, None, :], out, 0.0)


def _run_case(key, *, N, C_in, C_out, L, K, dilation, l_tile=1024, **fwd_kwargs):
    kx, kw, kb = jax.random.split(key, 3)
    x = jax.random.normal(kx, (N, C_in, L), dtype=jnp.float32)

    fan_in = C_in * K
    bound = 1.0 / np.sqrt(fan_in)
    weight = jax.random.uniform(kw, (C_out, C_in, K), jnp.float32, -bound, bound)
    bias = jax.random.uniform(kb, (C_out,), jnp.float32, -bound, bound)

    # Deterministic variable-length mask.
    lens = jnp.array([max(1, (i + 1) * L // N) for i in range(N)], dtype=jnp.int32)
    mask = jnp.arange(L)[None, :] < lens[:, None]                   # (N, L) bool

    out = conv_layer_forward(x, mask, weight, bias, dilation=dilation,
                             l_tile=l_tile, **fwd_kwargs)
    out = jax.block_until_ready(out)

    # Compare against an f32 (HIGHEST precision) reference fed the same
    # bf16-rounded inputs: isolates kernel indexing/halo/mask correctness from
    # the intended bf16 input quantization.
    x_q = x.astype(jnp.bfloat16).astype(jnp.float32)
    w_q = weight.astype(jnp.bfloat16).astype(jnp.float32)
    ref = jax.block_until_ready(_reference(x_q, mask, w_q, bias, dilation=dilation))
    np.testing.assert_allclose(np.asarray(out, dtype=np.float32),
                               np.asarray(ref), rtol=2e-3, atol=2e-3)


if __name__ == "__main__":
    key = jax.random.PRNGKey(0)
    k1, k2, k3, k4 = jax.random.split(key, 4)

    # Small shapes consistent with ConvLayer(in_channels, out_channels, dilation, kernel_size).
    # im2col path, single lane-dense tile (short L rounded up to 128).
    _run_case(k1, N=2, C_in=4, C_out=8, L=16, K=3, dilation=2, l_tile=512)
    # im2col path, multi-tile (exercises the main + halo-block stitching).
    _run_case(k2, N=2, C_in=4, C_out=8, L=300, K=3, dilation=3, l_tile=128)
    # Direct K-accumulated-dot path (forced via threshold), multi-tile, K=5.
    _run_case(k3, N=1, C_in=8, C_out=16, L=300, K=5, dilation=4, l_tile=128,
              direct_min_cin=1)
    # K=1 edge case (no halo).
    _run_case(k4, N=1, C_in=4, C_out=4, L=64, K=1, dilation=1, l_tile=128)

    print("KERNEL_OK")
</pallas_src>

<mosaic_0001>
module attributes {stable_mosaic.version = 11 : i64} {
  func.func @_conv_kernel_im2col(%arg0: i32, %arg1: i32, %arg2: memref<1x16x128xbf16, #tpu.memory_space<vmem>>, %arg3: memref<1x16x128xbf16, #tpu.memory_space<vmem>>, %arg4: memref<8x48xbf16, #tpu.memory_space<vmem>>, %arg5: memref<8x1xf32, #tpu.memory_space<vmem>>, %arg6: memref<1x1x128xi8, #tpu.memory_space<vmem>>, %arg7: memref<1x8x128xf32, #tpu.memory_space<vmem>>, %arg8: memref<48x128xbf16, #tpu.memory_space<vmem>>) attributes {dimension_semantics = [#tpu.dimension_semantics<parallel>, #tpu.dimension_semantics<parallel>], iteration_bounds = array<i64: 2, 1>, scalar_prefetch = 0 : i64, scratch_operands = 1 : i64, tpu.core_type = #tpu.core_type<tc>, window_params = [{transform_indices = @transform_0, window_bounds = array<i64: 1, 16, 128>}, {transform_indices = @transform_1, window_bounds = array<i64: 1, 16, 128>}, {pipeline_mode = #tpu.pipeline_mode<synchronous>, transform_indices = @transform_2, window_bounds = array<i64: 8, 48>}, {pipeline_mode = #tpu.pipeline_mode<synchronous>, transform_indices = @transform_3, window_bounds = array<i64: 8, 1>}, {transform_indices = @transform_4, window_bounds = array<i64: 1, 1, 128>}, {transform_indices = @transform_5, window_bounds = array<i64: 1, 8, 128>}]} {
    %c0 = arith.constant 0 : index
    %c0_0 = arith.constant 0 : index
    %c0_1 = arith.constant 0 : index
    %0 = vector.load %arg2[%c0, %c0_0, %c0_1] : memref<1x16x128xbf16, #tpu.memory_space<vmem>>, vector<1x16x128xbf16>
    %1 = vector.shape_cast %0 : vector<1x16x128xbf16> to vector<16x128xbf16>
    %c0_2 = arith.constant 0 : index
    %c0_3 = arith.constant 0 : index
    %2 = vector.load %arg8[%c0_2, %c0_3] : memref<48x128xbf16, #tpu.memory_space<vmem>>, vector<16x128xbf16>
    tpu.vector_store %arg8[%c0_2, %c0_3], %1 {strides = array<i32>} : memref<48x128xbf16, #tpu.memory_space<vmem>>, vector<16x128xbf16>,
    %c0_4 = arith.constant 0 : index
    %c0_5 = arith.constant 0 : index
    %c2 = arith.constant 2 : index
    %3 = vector.load %arg2[%c0_4, %c0_5, %c2] : memref<1x16x128xbf16, #tpu.memory_space<vmem>>, vector<1x16x126xbf16>
    %4 = vector.shape_cast %3 : vector<1x16x126xbf16> to vector<16x126xbf16>
    %c16 = arith.constant 16 : index
    %c0_6 = arith.constant 0 : index
    %5 = vector.load %arg8[%c16, %c0_6] : memref<48x128xbf16, #tpu.memory_space<vmem>>, vector<16x126xbf16>
    tpu.vector_store %arg8[%c16, %c0_6], %4 {strides = array<i32>} : memref<48x128xbf16, #tpu.memory_space<vmem>>, vector<16x126xbf16>,
    %c0_7 = arith.constant 0 : index
    %c0_8 = arith.constant 0 : index
    %c0_9 = arith.constant 0 : index
    %6 = vector.load %arg3[%c0_7, %c0_8, %c0_9] : memref<1x16x128xbf16, #tpu.memory_space<vmem>>, vector<1x16x2xbf16>
    %7 = vector.shape_cast %6 : vector<1x16x2xbf16> to vector<16x2xbf16>
    %c16_10 = arith.constant 16 : index
    %c126 = arith.constant 126 : index
    %8 = vector.load %arg8[%c16_10, %c126] : memref<48x128xbf16, #tpu.memory_space<vmem>>, vector<16x2xbf16>
    tpu.vector_store %arg8[%c16_10, %c126], %7 {strides = array<i32>} : memref<48x128xbf16, #tpu.memory_space<vmem>>, vector<16x2xbf16>,
    %c0_11 = arith.constant 0 : index
    %c0_12 = arith.constant 0 : index
    %c4 = arith.constant 4 : index
    %9 = vector.load %arg2[%c0_11, %c0_12, %c4] : memref<1x16x128xbf16, #tpu.memory_space<vmem>>, vector<1x16x124xbf16>
    %10 = vector.shape_cast %9 : vector<1x16x124xbf16> to vector<16x124xbf16>
    %c32 = arith.constant 32 : index
    %c0_13 = arith.constant 0 : index
    %11 = vector.load %arg8[%c32, %c0_13] : memref<48x128xbf16, #tpu.memory_space<vmem>>, vector<16x124xbf16>
    tpu.vector_store %arg8[%c32, %c0_13], %10 {strides = array<i32>} : memref<48x128xbf16, #tpu.memory_space<vmem>>, vector<16x124xbf16>,
    %c0_14 = arith.constant 0 : index
    %c0_15 = arith.constant 0 : index
    %c0_16 = arith.constant 0 : index
    %12 = vector.load %arg3[%c0_14, %c0_15, %c0_16] : memref<1x16x128xbf16, #tpu.memory_space<vmem>>, vector<1x16x4xbf16>
    %13 = vector.shape_cast %12 : vector<1x16x4xbf16> to vector<16x4xbf16>
    %c32_17 = arith.constant 32 : index
    %c124 = arith.constant 124 : index
    %14 = vector.load %arg8[%c32_17, %c124] : memref<48x128xbf16, #tpu.memory_space<vmem>>, vector<16x4xbf16>
    tpu.vector_store %arg8[%c32_17, %c124], %13 {strides = array<i32>} : memref<48x128xbf16, #tpu.memory_space<vmem>>, vector<16x4xbf16>,
    %c0_18 = arith.constant 0 : index
    %c0_19 = arith.constant 0 : index
    %15 = vector.load %arg4[%c0_18, %c0_19] : memref<8x48xbf16, #tpu.memory_space<vmem>>, vector<8x48xbf16>
    %c0_20 = arith.constant 0 : index
    %c0_21 = arith.constant 0 : index
    %16 = vector.load %arg8[%c0_20, %c0_21] : memref<48x128xbf16, #tpu.memory_space<vmem>>, vector<48x128xbf16>
    %cst = arith.constant dense<0.000000e+00> : vector<8x128xf32>
    %17 = tpu.matmul %15, %16, %cst {dimension_numbers = #tpu.dot_dimension_numbers<[1], [0], [0], [1], [0, 0, 1, 1], [], []>} : vector<8x48xbf16>, vector<48x128xbf16>, vector<8x128xf32> -> vector<8x128xf32>
    %c0_22 = arith.constant 0 : index
    %c0_23 = arith.constant 0 : index
    %18 = vector.load %arg5[%c0_22, %c0_23] : memref<8x1xf32, #tpu.memory_space<vmem>>, vector<8x1xf32>
    %19 = vector.broadcast %18 : vector<8x1xf32> to vector<8x128xf32>
    %20 = arith.addf %17, %19 : vector<8x128xf32>
    %c0_24 = arith.constant 0 : index
    %c0_25 = arith.constant 0 : index
    %c0_26 = arith.constant 0 : index
    %21 = vector.load %arg6[%c0_24, %c0_25, %c0_26] : memref<1x1x128xi8, #tpu.memory_space<vmem>>, vector<1x1x128xi8>
    %22 = vector.shape_cast %21 : vector<1x1x128xi8> to vector<1x128xi8>
    %23 = arith.extsi %22 : vector<1x128xi8> to vector<1x128xi32>
    %c0_i32 = arith.constant 0 : i32
    %24 = vector.broadcast %c0_i32 : i32 to vector<1x128xi32>
    %25 = arith.cmpi ne, %23, %24 : vector<1x128xi32>
    %cst_27 = arith.constant 0.000000e+00 : f32
    %26 = vector.shape_cast %25 : vector<1x128xi1> to vector<1x128xi1>
    %27 = vector.broadcast %26 : vector<1x128xi1> to vector<8x128xi1>
    %28 = vector.broadcast %cst_27 : f32 to vector<8x128xf32>
    %29 = arith.select %27, %20, %28 : vector<8x128xi1>, vector<8x128xf32>
    %c0_28 = arith.constant 0 : index
    %c0_29 = arith.constant 0 : index
    %c0_30 = arith.constant 0 : index
    %30 = vector.load %arg7[%c0_28, %c0_29, %c0_30] : memref<1x8x128xf32, #tpu.memory_space<vmem>>, vector<1x8x128xf32>
    %31 = vector.shape_cast %30 : vector<1x8x128xf32> to vector<8x128xf32>
    %32 = vector.shape_cast %29 : vector<8x128xf32> to vector<1x8x128xf32>
    tpu.vector_store %arg7[%c0_28, %c0_29, %c0_30], %32 {strides = array<i32>} : memref<1x8x128xf32, #tpu.memory_space<vmem>>, vector<1x8x128xf32>,
    return
  }
  func.func @transform_0(%arg0: i32, %arg1: i32) -> (i32, i32, i32) {
    %c0_i32 = arith.constant 0 : i32
    %c0_i32_0 = arith.constant 0 : i32
    return %arg0, %c0_i32, %arg1 : i32, i32, i32
  }
  func.func @transform_1(%arg0: i32, %arg1: i32) -> (i32, i32, i32) {
    %c1_i32 = arith.constant 1 : i32
    %0 = arith.addi %arg1, %c1_i32 : i32
    %c1_i32_0 = arith.constant 1 : i32
    %1 = arith.muli %0, %c1_i32_0 : i32
    %c0_i32 = arith.constant 0 : i32
    %c0_i32_1 = arith.constant 0 : i32
    return %arg0, %c0_i32, %1 : i32, i32, i32
  }
  func.func @transform_2(%arg0: i32, %arg1: i32) -> (i32, i32) {
    %c0_i32 = arith.constant 0 : i32
    %c0_i32_0 = arith.constant 0 : i32
    %c0_i32_1 = arith.constant 0 : i32
    return %c0_i32, %c0_i32_0 : i32, i32
  }
  func.func @transform_3(%arg0: i32, %arg1: i32) -> (i32, i32) {
    %c0_i32 = arith.constant 0 : i32
    %c0_i32_0 = arith.constant 0 : i32
    %c0_i32_1 = arith.constant 0 : i32
    return %c0_i32, %c0_i32_0 : i32, i32
  }
  func.func @transform_4(%arg0: i32, %arg1: i32) -> (i32, i32, i32) {
    %c0_i32 = arith.constant 0 : i32
    %c0_i32_0 = arith.constant 0 : i32
    return %arg0, %c0_i32, %arg1 : i32, i32, i32
  }
  func.func @transform_5(%arg0: i32, %arg1: i32) -> (i32, i32, i32) {
    %c0_i32 = arith.constant 0 : i32
    %c0_i32_0 = arith.constant 0 : i32
    return %arg0, %c0_i32, %arg1 : i32, i32, i32
  }
}

</mosaic_0001>

<bundles_post_ra>
// kernel: tpu_custom_call.1
= control target key start
LH: loop header
LB: loop body
LE: loop exit
PB: predicated region body
PF: predicated region fallthrough
CT: control target
= control target key end

     0   :  { %s1037_s0 = inlined_call_operand.hbm [shape: bf16[2,16,256], index: 0, kind: input, shape index: {}]   ;;  %s1038_s1 = inlined_call_operand.hbm [shape: bf16[2,16,256], index: 1, kind: input, shape index: {}]   ;;  %s1039_s2 = inlined_call_operand.vmem [shape: bf16[8,48], index: 2, kind: input, shape index: {}]   ;;  %s1040_s3 = inlined_call_operand.vmem [shape: f32[8,1], index: 3, kind: input, shape index: {}]   ;;  %s1041_s4 = inlined_call_operand.vmem [shape: s8[2,1,128], index: 4, kind: input, shape index: {}]   ;;  %s1042_s5 = inlined_call_operand.hbm [shape: f32[2,8,128], index: 5, kind: output, shape index: {}]  }
   0x1   :  { %1045 = sst [smem:[#allocation15_spill]] %s1037_s0 }
   0x2   :  { %10 = vsyncpa [#allocation4], 0 }
   0x3   :  { %12 = vsyncpa [#allocation4 + $0x1], 0 }
   0x4   :  { %13 = vsyncpa [#allocation7], 0 }
   0x5   :  { %15 = vsyncpa [#allocation7 + $0x1], 0 }
   0x6   :  { %16 = vsyncpa [#allocation5], 0 }
   0x7   :  { %18 = vsyncpa [#allocation5 + $0x1], 0  ;;  %s880_s18 = smov 0   ;;  %s882_s19 = smov 0  }
   0x8   :  { %s884_s20 = smov 0   ;;  %s886_s21 = smov 0  }
   0x9   :  { %s888_s22 = smov 0   ;;  %s890_s23 = smov 0  }
   0xa LB: > { %1046 = sst [smem:[#allocation12_spill]] %s838_s22  ;;  %s585_s24 = sadd.s32 4294967295, %s842_s23   ;;  %s842_s23 = sphi %s890_s23, %s24_s23   ;;  %s838_s22 = sphi %s888_s22, %s1057_s22   ;;  %s834_s21 = sphi %s886_s21, %s1056_s21   ;;  %s830_s20 = sphi %s884_s20, %s1060_s20   ;;  %s826_s19 = sphi %s882_s19, %s1059_s19   ;;  %s822_s18 = sphi %s880_s18, %s1058_s18  }
   0xb   : > { %s586_s25 = sadd.s32 4294967294, %s842_s23   ;;  %s36_s26 = sadd.s32 1, %s838_s22 }
   0xc   : > { %s45_s27 = sadd.s32 1, %s830_s20  ;;  %p38_p0 = scmp.ge.s32.totalorder %s36_s26, 2 }
   0xd   : > { %p52_p1 = scmp.ne.s32.totalorder %s830_s20, %s826_s19  ;;  %p53_p2 = scmp.eq.s32.totalorder %s842_s23, 0 }
   0xe   : > { %p58_p3 = scmp.ne.s32.totalorder %s826_s19, %s822_s18  ;;  %s1062_s26 = smov (%p38_p0, %s36_s26), 0 }
   0xf   : > { %1047 = sst [smem:[#allocation13_spill]] %s1062_s26  ;;  %p921_p4 = por %p53_p2, %p52_p1 }
  0x10   : > { %p59_p5 = scmp.eq.s32.totalorder %s585_s24, 0  ;;  %s40_s29 = ssub.s32 %s838_s22, %s1062_s26 }
  0x11   : > { %p184_p6 = scmp.eq.s32.totalorder %s585_s24, 1  ;;  %p43_p7 = scmp.eq.s32.totalorder %s40_s29, 0 }
  0x12   : > { %p927_p8 = por %p59_p5, %p58_p3  ;;  %p190_p10 = scmp.eq.s32.totalorder %s586_s25, 1 }
  0x13   : > { %p931_p9 = por %p184_p6, %p52_p1  ;;  %p588_p12 = scmp.ge.s32.totalorder %s842_s23, 2 }
  0x14   : > { %s936_s7 = scalar_select %p43_p7, %s830_s20, %s45_s27  }
  0x15   : > { %p938_p11 = por %p190_p10, %p58_p3  ;;  %p638_p13 = scmp.lt.s32.totalorder %s842_s23, 2 }
  0x16   : > { %1051 = sst [smem:[#allocation14_spill]] %s936_s7  ;;  %s945_s9 = sand.u32 1, %s830_s20  }
  0x17   : > { %s589_s10 = sshll.u32 %s945_s9, 3  ;;  %s616_s11 = sshll.u32 %s838_s22, 4 }
  0x18   : > { %s1053_s0 = sld [smem:[#allocation15_spill]]  ;;  %s220_s15 = scalar_lea.vmem [#allocation3], %s589_s10 }
  0x19   : > { %s229_s16 = sshll.u32 %s220_s15, 4  ;;  %p954_p0 = pnand %p638_p13, %p921_p4  ;;  %s230_s16 = int_to_ptr.vmem [resolvable:$true] %s229_s16 }
  0x1a   : > { %s217_s25 = scalar_lea.sflag [#allocation4], %s945_s9  ;;  %s844_s27 = smov 128  }
  0x1b   : > { %s845_s29 = smov 64   ;;  %s846_s26 = smov 4  }
  0x1c   : > { %p595_p1 = scmp.ge.s32.totalorder %s842_s23, 1  ;;  %p270_p2 = scmp.lt.s32.totalorder %s842_s23, 3 }
  0x1d   : > { %s506_s28 = scalar_lea.hbm %s1038_s1, %s616_s11  ;;  %s243_s15 = scalar_lea.vmem [#allocation6], %s589_s10 }
  0x1e   : > { %s226_s14 = scalar_lea.hbm %s1053_s0, %s616_s11  ;;  %p271_p3 = pnand %p595_p1, %p270_p2 }
  0x1f   : > { %s227_s17 = sshll.u32 %s226_s14, 4  ;;  %s507_s14 = scalar_lea.hbm %s506_s28, 4  ;;  %s228_s17 = int_to_ptr.hbm [resolvable:$true] %s227_s17 }
  0x20   : > { %630 = dma.hbm_to_vmem [thread:$0]  (!%p954_p0), %s228_s17, 128, %s230_s16, %s217_s25, %s844_s27, %s845_s29, %s846_s26  }
  0x21   : > { %s253_s0 = sshll.u32 %s243_s15, 4  ;;  %s251_s22 = sshll.u32 %s507_s14, 4  ;;  %s254_s0 = int_to_ptr.vmem [resolvable:$true] %s253_s0  ;;  %s252_s22 = int_to_ptr.hbm [resolvable:$true] %s251_s22 }
  0x22   : > { %s240_s7 = scalar_lea.sflag [#allocation7], %s945_s9  ;;  %274 = sbr.rel (%p271_p3) target bundleno = 324 (0x144), region = 40 }
  0x23   : > { %633 = dma.hbm_to_vmem [thread:$0]  (!%p954_p0), %s252_s22, 128, %s254_s0, %s240_s7, %s844_s27, %s845_s29, %s846_s26  }
  0x24   : > { %s970_s16 = sand.u32 (!%p271_p3), 1, %s826_s19  }
  0x25   : > { %s973_s17 = sshll.u32 (!%p271_p3), %s970_s16, 3  ;;  %s277_s11 = scalar_lea.sflag (!%p271_p3), [#allocation4], %s970_s16 }
  0x26   : > { %s280_s25 = scalar_lea.vmem (!%p271_p3), [#allocation3], %s973_s17 }
  0x27   : > { %809 = dma.done.wait (%p927_p8), %s277_s11, 128  }
  0x28   : > { %811 = vsyncadd (%p927_p8), %s277_s11, 4294967168  ;;  %s287_s0 = scalar_lea.sflag [#allocation7], %s970_s16  ;;  %s290_s22 = scalar_lea.vmem [#allocation6], %s973_s17 }
  0x29   : > { %813 = dma.done.wait (%p927_p8), %s287_s0, 128  }
  0x2a   : > { %815 = vsyncadd (%p927_p8), %s287_s0, 4294967168  ;;  %v380_v0 = vld [vmem:[%s290_s22] sm:$0xf]  ;;  %v367_v1 = vld [vmem:[%s280_s25] sm:$0xf]  ;;  %s847_s26 = smov 124  }
  0x2b   : > { %384 = vrot.lane.b32.xlu1 %v380_v0, %s847_s26  ;;  %371 = vrot.lane.b32.xlu0 %v367_v1, %s847_s26  ;;  %v341_v2 = vld [vmem:[%s280_s25] sm:$0xf]  ;;  %s848_s7 = smov 126   ;;  %v381_v3 = vld [vmem:[%s290_s22 + $0x4] sm:$0xf]  ;;  %vm351_vm0 = vcmask 1027072  }
  0x2c   : > { %345 = vrot.lane.b32.xlu2 %v341_v2, %s848_s7  ;;  %v368_v4 = vld [vmem:[%s280_s25 + $0x4] sm:$0xf]  ;;  %v355_v6 = vld [vmem:[%s290_s22 + $0x4] sm:$0xf]  ;;  %v354_v7 = vld [vmem:[%s290_s22] sm:$0xf] }
  0x2d   : > { %v342_v5 = vld [vmem:[%s280_s25 + $0x4] sm:$0xf]  ;;  %vm377_vm1 = vcmask 1010688   ;;  %vm390_vm2 = vcmask 1044448   ;;  %v849_v14 = vmov 0   ;;  %vm364_vm3 = vcmask 1044464  }
  0x2e   : > { %v337_v10 = vld [vmem:[%s280_s25] sm:$0xff]   ;;  %694 = vset.pattern.permute.xlu2 %v849_v14  ;;  %695 = vset.pattern.permute.xlu0 %v849_v14  ;;  %vm424_vm4 = vcmask 392192   ;;  %p330_p4 = scmp.lt.s32.totalorder %s834_s21, 1  ;;  %s613_s28 = sshll.u32 %s834_s21, 3 }
  0x2f   : > { %339 = vst [vmem:[#allocation2] sm:$0xff] %v337_v10   ;;  %v400_v13 = vld [vmem:[%s1040_s3] sm:$0xff]  ;;  %s461_s11 = scalar_lea.hbm %s1042_s5, %s613_s28  ;;  %s328_s25 = scalar_lea.vmem [#allocation8], %s973_s17 }
  0x30   : > { %v393_v22 = vld [vmem:[%s1039_s2] sm:$0xf]  ;;  %s331_s27 = scalar_select %p330_p4, %s834_s21, 1 }
  0x31   : > { %s463_s0 = sshll.u32 %s328_s25, 4  ;;  %s465_s22 = sshll.u32 %s461_s11, 4  ;;  %s464_s0 = int_to_ptr.vmem [resolvable:$true] %s463_s0  ;;  %s466_s22 = int_to_ptr.hbm [resolvable:$true] %s465_s22 }
  0x32   : > { %s335_s13 = scalar_lea.vmem %s1041_s4, %s331_s27  ;;  %s776_s17 = scalar_lea.hbm %s1042_s5, 16 }
  0x33   : > { %386 = vrot.lane.b32.xlu1 %v381_v3, %s847_s26  ;;  %373 = vrot.lane.b32.xlu0 %v368_v4, %s847_s26  ;;  %v441_v23 = vld [vmem:[%s335_s13] sm:$0x1]  ;;  %s450_s26 = scalar_lea.sflag [#allocation5], %s970_s16 }
  0x34   : > { %347 = vrot.lane.b32.xlu2 %v342_v5, %s848_s7  ;;  %v442_v24 = vunpack.c.0.s8 %v441_v23 }
  0x36   : > { %v618_v21 = vld [vmem:[#allocation2] sm:$0xff]  ;;  %vm443_vm5 = vcmp.ne.s32.totalorder %v442_v24, 0 }
  0x37   : > { %v444_v25 = vsel %vm443_vm5, 1, %v849_v14 }
  0x38   : > { %v445_v26 = vperm.slane %v444_v25, 0 }
  0x3a   : > { %vm446_vm6 = vcmp.eq.s32.totalorder %v445_v26, 1 }
  0x3b   : > { %360 = vrot.lane.b32.xlu1 %v355_v6, %s848_s7  ;;  %358 = vrot.lane.b32.xlu0 %v354_v7, %s848_s7  ;;  %s770_s7 = sshra.s32 %s466_s22, 4  ;;  %s771_s7 = int_to_ptr.hbm [resolvable:$true] %s770_s7 }
  0x3c   : > { %403 = vperm.xlu2 %694, %v400_v13   ;;  %s772_s21 = scalar_lea.hbm %s771_s7, 8  ;;  %p777_p8 = scmp.lt.s32.totalorder %s771_s7, %s1042_s5 }
  0x3d   : > { %p773_p5 = scmp.ne.s32.totalorder %s771_s7, %s772_s21  ;;  %p778_p10 = scmp.lt.s32.totalorder %s776_s17, %s772_s21 }
  0x3f   : > { %p774_p6 = pnand %p773_p5, %p931_p9  ;;  %p779_p13 = por %p778_p10, %p777_p8 }
  0x41   : > { %p775_p7 = pneg %p774_p6 }
  0x43   : > { %p780_p0 = pnand %p779_p13, %p775_p7 }
  0x86   : > { %v346_v8 = vpop.permute.xlu2 %345 }
  0x87   : > { %352 = vst.msk [vmem:[#allocation2 + $0x8] sm:$0xf] %vm351_vm0, %v346_v8 }
  0x8e   : > { %v348_v9 = vpop.permute.xlu2 %347 }
  0x8f   : > { %353 = vst.msk [vmem:[#allocation2 + $0xc] sm:$0xf] %vm351_vm0, %v348_v9 }
  0x96   : > { %v404_v27 = vpop.permute.xlu2 %403 }
  0x9d   : > { %v385_v11 = vpop.permute.xlu1 %384  ;;  %v372_v12 = vpop.permute.xlu0 %371 }
  0x9e   : > { %378 = vst.msk [vmem:[#allocation2 + $0x10] sm:$0xf] %vm377_vm1, %v372_v12 }
  0x9f   : > { %391 = vst.msk [vmem:[#allocation2 + $0x10] sm:$0xf] %vm390_vm2, %v385_v11 }
  0xa5   : > { %v387_v15 = vpop.permute.xlu1 %386  ;;  %v374_v16 = vpop.permute.xlu0 %373 }
  0xa6   : > { %379 = vst.msk [vmem:[#allocation2 + $0x14] sm:$0xf] %vm377_vm1, %v374_v16 }
  0xa7   : > { %392 = vst.msk [vmem:[#allocation2 + $0x14] sm:$0xf] %vm390_vm2, %v387_v15 }
  0xad   : > { %v361_v17 = vpop.permute.xlu1 %360  ;;  %v359_v18 = vpop.permute.xlu0 %358 }
  0xae   : > { %366 = vst.msk [vmem:[#allocation2 + $0xc] sm:$0xf] %vm364_vm3, %v361_v17  ;;  %v620_v19 = vld [vmem:[#allocation2 + $0x10] sm:$0xff] }
  0xaf   : > { %365 = vst.msk [vmem:[#allocation2 + $0x8] sm:$0xf] %vm364_vm3, %v359_v18  ;;  %433 = vmatpush.bf16.msra.mxu0 %v620_v19 }
  0xb6   : > { %v619_v20 = vld [vmem:[#allocation2 + $0x8] sm:$0xff] }
  0xb7   : > { %434 = vmatpush.bf16.msra.mxu0 %v619_v20 }
  0xbb   : > { %435 = vmatpush.bf16.msra.mxu0 %v618_v21 }
  0xbe   : > { %611 = vmatmul.msk.bf16.vlgmr.msra.gmra.mxu0 %vm424_vm4, %v393_v22 }
 0x13b   : > { %v437_v28 = vpop.f32.mrf.mxu0 }
 0x13c   : > { %v438_v29 = vadd.f32 %v437_v28, %v404_v27 }
 0x13e   : > { %v447_v30 = vsel %vm446_vm6, %v438_v29, 0.0 }
 0x13f   : > { %448 = vst [vmem:[%s328_s25] sm:$0xff] %v447_v30 }
 0x140   : > { %783 = shalt.err (!%p780_p0)
}
 0x141   : > { %625 = dma.vmem_to_hbm [thread:$0]  (%p931_p9), %s464_s0, 128, %s466_s22, %s450_s26  }
 0x143   : > { %v439_v31 = vpop.f32.mrf.mxu0 }
 0x144 PF: > { %s477_s16 = sand.u32 1, %s822_s18   ;;  %p635_p1 = pnand %p588_p12, %p938_p11 }
 0x145   : > { %s478_s27 = scalar_lea.sflag [#allocation5], %s477_s16 }
 0x146   : > { %p636_p2 = pneg %p635_p1 }
 0x148   : > { %817 = dma.done.wait (%p636_p2), %s478_s27, 128  }
 0x149   : > { %819 = vsyncadd (%p636_p2), %s478_s27, 4294967168  ;;  %s24_s23 = sadd.s32 1, %s842_s23   ;;  %s1055_s6 = sld [smem:[#allocation14_spill]] }
 0x14a   : > { %p21_p3 = scmp.ge.s32.totalorder %s24_s23, 4   ;;  %s1056_s21 = sld [smem:[#allocation12_spill]] }
 0x14b   : > { %s1057_s22 = sld [smem:[#allocation13_spill]]  ;;  %s1058_s18 = smov %s826_s19 }
 0x14c   : > { %s1059_s19 = smov %s830_s20  ;;  %23 = sbr.rel (!%p21_p3) target bundleno = 10 (0xa), region = 101 }
 0x14f   : > { %s1060_s20 = smov %s1055_s6 }
 0x151   :  { %484 = vsyncpa [#allocation4], 1 }
 0x152   :  { %486 = vsyncpa [#allocation4 + $0x1], 1 }
 0x153   :  { %487 = vsyncpa [#allocation7], 1 }
 0x154   :  { %489 = vsyncpa [#allocation7 + $0x1], 1 }
 0x155   :  { %490 = vsyncpa [#allocation5], 1 }
 0x156   :  { %492 = vsyncpa [#allocation5 + $0x1], 1 }

</bundles_post_ra>
